<compile_context>
chip_gen: v5e
topology: v5e:2x2
jax: 0.10.0
libtpu: 0.0.40
codegen_flags: <defaults>
</compile_context>

<pallas_src>
import functools

import jax
import jax.numpy as jnp
from jax import lax
from jax.experimental import pallas as pl
from jax.experimental.pallas import tpu as pltpu


LANES = 128                       # vreg lane width: last dim of every block
NUM_PARTIALS = 2                  # matches v7x's 2 TensorCores; harmless on 1-TC chips
EPS = 1e-6
MAX_BLOCK_BYTES = 4 * 1024 * 1024 # per-input, per-block VMEM footprint target
VMEM_LIMIT_BYTES = 32 * 1024 * 1024


def _sublane_multiple(dtype) -> int:
    """Native sublane tiling for the dtype: f32->8, bf16->16, int8/fp8->32."""
    return {4: 8, 2: 16, 1: 32}.get(jnp.dtype(dtype).itemsize, 8)


# ----------------------------- kernel -------------------------------------- #

def _rmse_partial_kernel(yhat_ref, y_ref, partial_ref, *,
                         block_rows, steps_per_partial, valid_rows):
    """Grid = (NUM_PARTIALS, steps_per_partial).

    Axis 0 ("parallel"): independent partial sums, one (1, 8, 128) output
    block each (megacore-shardable on v7x).
    Axis 1 ("arbitrary"): sequential walk over row-blocks; the output block
    stays resident and acts as a pure-VPU vector accumulator.
    """
    c = pl.program_id(0)          # partial-sum / core index
    s = pl.program_id(1)          # sequential reduction step

    @pl.when(s == 0)
    def _init():
        partial_ref[...] = jnp.zeros_like(partial_ref)

    # Row-validity mask.  Handles (a) the ragged final block, (b) the clamped
    # duplicate block a slice may see when total_blocks doesn't split evenly
    # across NUM_PARTIALS, and (c) tiny inputs smaller than one block.
    block_idx = c * steps_per_partial + s
    row0 = block_idx * block_rows
    row_ids = row0 + lax.broadcasted_iota(jnp.int32, (block_rows, LANES), 0)
    mask = row_ids < valid_rows

    d = yhat_ref[...].astype(jnp.float32) - y_ref[...].astype(jnp.float32)
    sq = jnp.where(mask, d * d, 0.0)

    # Fold the block onto an (8, 128) vreg accumulator: pure vreg adds, no
    # per-step cross-lane reduction and no scalar SMEM read-modify-write.
    partial_ref[...] += jnp.sum(sq.reshape(-1, 8, LANES), axis=0)[None]


# ----------------------------- wrapper ------------------------------------- #

def rmse_loss(yhat, y, *, eps=EPS, max_block_bytes=MAX_BLOCK_BYTES):
    """Pallas implementation of RMSELoss.forward: sqrt(mean((yhat-y)^2) + eps)."""
    assert yhat.shape == y.shape, "yhat and y must have the same shape"
    n = yhat.size
    assert n > 0, "empty input"

    rows = pl.cdiv(n, LANES)                       # true row count of the slab
    sub = max(_sublane_multiple(yhat.dtype), _sublane_multiple(y.dtype))
    itemsize = max(jnp.dtype(yhat.dtype).itemsize, jnp.dtype(y.dtype).itemsize)

    # Largest dtype-aligned block that fits the per-block VMEM budget.
    max_block_rows = max(sub, (max_block_bytes // (LANES * itemsize)) // sub * sub)
    rows_rounded = pl.cdiv(rows, sub) * sub
    block_rows = min(rows_rounded, max_block_rows)

    total_blocks = pl.cdiv(rows, block_rows)
    steps_per_partial = pl.cdiv(total_blocks, NUM_PARTIALS)

    def _prep(a):
        flat = a.reshape(-1)
        pad = rows * LANES - n
        if pad:                                    # only when n % 128 != 0
            flat = jnp.pad(flat, (0, pad))         # minimal pad to a 128 multiple
        return flat.reshape(rows, LANES)           # otherwise a free reshape

    yhat2 = _prep(yhat)
    y2 = _prep(y)

    def in_index(c, s):
        # Clamp so the DMA never targets a block fully outside the array; the
        # in-kernel mask (built from the *unclamped* index) zeroes its
        # contribution, so a clamped re-read is harmless.
        return (jnp.minimum(c * steps_per_partial + s, total_blocks - 1), 0)

    kernel = functools.partial(
        _rmse_partial_kernel,
        block_rows=block_rows,
        steps_per_partial=steps_per_partial,
        valid_rows=rows,
    )

    bytes_in = n * (jnp.dtype(yhat.dtype).itemsize + jnp.dtype(y.dtype).itemsize)
    partials = pl.pallas_call(
        kernel,
        out_shape=jax.ShapeDtypeStruct((NUM_PARTIALS, 8, LANES), jnp.float32),
        grid_spec=pltpu.PrefetchScalarGridSpec(
            num_scalar_prefetch=0,
            grid=(NUM_PARTIALS, steps_per_partial),
            in_specs=[
                pl.BlockSpec((block_rows, LANES), in_index),
                pl.BlockSpec((block_rows, LANES), in_index),
            ],
            out_specs=pl.BlockSpec((1, 8, LANES), lambda c, s: (c, 0, 0)),
        ),
        compiler_params=pltpu.CompilerParams(
            dimension_semantics=("parallel", "arbitrary"),
            vmem_limit_bytes=VMEM_LIMIT_BYTES,
        ),
        cost_estimate=pl.CostEstimate(
            flops=3 * n,
            transcendentals=0,
            bytes_accessed=bytes_in + NUM_PARTIALS * 8 * LANES * 4,
        ),
    )(yhat2, y2)

    total = jnp.sum(partials, dtype=jnp.float32)   # tiny (2, 8, 128) reduce
    return jnp.sqrt(total / jnp.float32(n) + jnp.float32(eps))


# ------------------------------- main --------------------------------------- #

def _ref_rmse(yhat, y, eps):
    d = yhat.astype(jnp.float32) - y.astype(jnp.float32)
    return jnp.sqrt(jnp.mean(d * d) + eps)


if __name__ == "__main__":
    key = jax.random.PRNGKey(0)
    k1, k2, k3, k4, k5, k6, k7, k8, k9, k10 = jax.random.split(key, 10)

    # 1) Small case (B, S, D) = (2, 8, 32); n % 128 == 0 -> zero-copy path.
    yhat = jax.random.normal(k1, (2, 8, 32), dtype=jnp.float32)
    y = jax.random.normal(k2, (2, 8, 32), dtype=jnp.float32)
    loss = jax.block_until_ready(rmse_loss(yhat, y))
    ref = _ref_rmse(yhat, y, EPS)
    assert loss.shape == (), f"expected scalar, got {loss.shape}"
    assert jnp.allclose(loss, ref, atol=1e-6, rtol=1e-5), (loss, ref)

    # 2) Multi-block accumulation across both partials (grid = (2, 4)).
    yb = jax.random.normal(k3, (16, 128, 128), dtype=jnp.float32)
    zb = jax.random.normal(k4, (16, 128, 128), dtype=jnp.float32)
    loss2 = jax.block_until_ready(rmse_loss(yb, zb, max_block_bytes=128 * 1024))
    ref2 = _ref_rmse(yb, zb, EPS)
    assert jnp.allclose(loss2, ref2, atol=1e-5, rtol=1e-4), (loss2, ref2)

    # 3) Ragged size (n % 128 != 0) -> minimal pad + in-kernel row masking.
    yr = jax.random.normal(k5, (3, 5, 7), dtype=jnp.float32)
    zr = jax.random.normal(k6, (3, 5, 7), dtype=jnp.float32)
    loss3 = jax.block_until_ready(rmse_loss(yr, zr))
    ref3 = _ref_rmse(yr, zr, EPS)
    assert jnp.allclose(loss3, ref3, atol=1e-6, rtol=1e-5), (loss3, ref3)

    # 4) Odd block count (total_blocks = 3, grid = (2, 2)) -> exercises the
    #    clamped duplicate block + mask path.
    yo = jax.random.normal(k7, (3, 256, 128), dtype=jnp.float32)
    zo = jax.random.normal(k8, (3, 256, 128), dtype=jnp.float32)
    loss4 = jax.block_until_ready(rmse_loss(yo, zo, max_block_bytes=128 * 1024))
    ref4 = _ref_rmse(yo, zo, EPS)
    assert jnp.allclose(loss4, ref4, atol=1e-5, rtol=1e-4), (loss4, ref4)

    # 5) bf16 inputs -> dtype-aware (16, 128) sublane alignment, f32 accumulate.
    yh16 = jax.random.normal(k9, (8, 128, 128), dtype=jnp.bfloat16)
    yt16 = jax.random.normal(k10, (8, 128, 128), dtype=jnp.bfloat16)
    loss5 = jax.block_until_ready(rmse_loss(yh16, yt16))
    ref5 = _ref_rmse(yh16, yt16, EPS)
    assert jnp.allclose(loss5, ref5, atol=1e-4, rtol=1e-3), (loss5, ref5)

    print("KERNEL_OK")
</pallas_src>

<mosaic_0001>
module attributes {stable_mosaic.version = 11 : i64} {
  func.func @_rmse_partial_kernel(%arg0: i32, %arg1: i32, %arg2: memref<8x128xf32, #tpu.memory_space<vmem>>, %arg3: memref<8x128xf32, #tpu.memory_space<vmem>>, %arg4: memref<1x8x128xf32, #tpu.memory_space<vmem>>) attributes {dimension_semantics = [#tpu.dimension_semantics<parallel>, #tpu.dimension_semantics<arbitrary>], iteration_bounds = array<i64: 2, 1>, scalar_prefetch = 0 : i64, scratch_operands = 0 : i64, tpu.core_type = #tpu.core_type<tc>, window_params = [{transform_indices = @transform_0, window_bounds = array<i64: 8, 128>}, {transform_indices = @transform_1, window_bounds = array<i64: 8, 128>}, {transform_indices = @transform_2, window_bounds = array<i64: 1, 8, 128>}]} {
    %c0_i32 = arith.constant 0 : i32
    %0 = arith.cmpi eq, %arg1, %c0_i32 : i32
    %1 = arith.extui %0 : i1 to i32
    %c0_i32_0 = arith.constant 0 : i32
    %2 = arith.cmpi ne, %1, %c0_i32_0 : i32
    scf.if %2 {
      %cst_11 = arith.constant 0.000000e+00 : f32
      %23 = vector.broadcast %cst_11 : f32 to vector<1x8x128xf32>
      %c0_12 = arith.constant 0 : index
      %c0_13 = arith.constant 0 : index
      %c0_14 = arith.constant 0 : index
      %24 = vector.load %arg4[%c0_12, %c0_13, %c0_14] : memref<1x8x128xf32, #tpu.memory_space<vmem>>, vector<1x8x128xf32>
      tpu.vector_store %arg4[%c0_12, %c0_13, %c0_14], %23 {strides = array<i32>} : memref<1x8x128xf32, #tpu.memory_space<vmem>>, vector<1x8x128xf32>,
    } else {
    }
    %c1_i32 = arith.constant 1 : i32
    %3 = arith.muli %arg0, %c1_i32 : i32
    %4 = arith.addi %3, %arg1 : i32
    %c8_i32 = arith.constant 8 : i32
    %5 = arith.muli %4, %c8_i32 : i32
    %6 = tpu.iota {dimensions = array<i32: 0>} : vector<8x128xi32>
    %7 = vector.broadcast %5 : i32 to vector<8x128xi32>
    %8 = arith.addi %7, %6 : vector<8x128xi32>
    %c4_i32 = arith.constant 4 : i32
    %9 = vector.broadcast %c4_i32 : i32 to vector<8x128xi32>
    %10 = arith.cmpi slt, %8, %9 : vector<8x128xi32>
    %c0 = arith.constant 0 : index
    %c0_1 = arith.constant 0 : index
    %11 = vector.load %arg2[%c0, %c0_1] : memref<8x128xf32, #tpu.memory_space<vmem>>, vector<8x128xf32>
    %c0_2 = arith.constant 0 : index
    %c0_3 = arith.constant 0 : index
    %12 = vector.load %arg3[%c0_2, %c0_3] : memref<8x128xf32, #tpu.memory_space<vmem>>, vector<8x128xf32>
    %13 = arith.subf %11, %12 : vector<8x128xf32>
    %14 = arith.mulf %13, %13 : vector<8x128xf32>
    %cst = arith.constant 0.000000e+00 : f32
    %15 = vector.broadcast %cst : f32 to vector<8x128xf32>
    %16 = arith.select %10, %14, %15 : vector<8x128xi1>, vector<8x128xf32>
    %c0_4 = arith.constant 0 : index
    %c0_5 = arith.constant 0 : index
    %c0_6 = arith.constant 0 : index
    %17 = vector.load %arg4[%c0_4, %c0_5, %c0_6] : memref<1x8x128xf32, #tpu.memory_space<vmem>>, vector<1x8x128xf32>
    %18 = vector.shape_cast %16 : vector<8x128xf32> to vector<1x8x128xf32>
    %cst_7 = arith.constant dense<0.000000e+00> : vector<8x128xf32>
    %19 = vector.multi_reduction <add>, %18, %cst_7 [0] : vector<1x8x128xf32> to vector<8x128xf32>
    %20 = vector.shape_cast %19 : vector<8x128xf32> to vector<1x8x128xf32>
    %21 = arith.addf %17, %20 : vector<1x8x128xf32>
    %c0_8 = arith.constant 0 : index
    %c0_9 = arith.constant 0 : index
    %c0_10 = arith.constant 0 : index
    %22 = vector.load %arg4[%c0_8, %c0_9, %c0_10] : memref<1x8x128xf32, #tpu.memory_space<vmem>>, vector<1x8x128xf32>
    tpu.vector_store %arg4[%c0_8, %c0_9, %c0_10], %21 {strides = array<i32>} : memref<1x8x128xf32, #tpu.memory_space<vmem>>, vector<1x8x128xf32>,
    return
  }
  func.func @transform_0(%arg0: i32, %arg1: i32) -> (i32, i32) {
    %c1_i32 = arith.constant 1 : i32
    %0 = arith.muli %arg0, %c1_i32 : i32
    %1 = arith.addi %0, %arg1 : i32
    %c0_i32 = arith.constant 0 : i32
    %2 = arith.minsi %1, %c0_i32 : i32
    %c0_i32_0 = arith.constant 0 : i32
    %c0_i32_1 = arith.constant 0 : i32
    return %2, %c0_i32_0 : i32, i32
  }
  func.func @transform_1(%arg0: i32, %arg1: i32) -> (i32, i32) {
    %c1_i32 = arith.constant 1 : i32
    %0 = arith.muli %arg0, %c1_i32 : i32
    %1 = arith.addi %0, %arg1 : i32
    %c0_i32 = arith.constant 0 : i32
    %2 = arith.minsi %1, %c0_i32 : i32
    %c0_i32_0 = arith.constant 0 : i32
    %c0_i32_1 = arith.constant 0 : i32
    return %2, %c0_i32_0 : i32, i32
  }
  func.func @transform_2(%arg0: i32, %arg1: i32) -> (i32, i32, i32) {
    %c0_i32 = arith.constant 0 : i32
    %c0_i32_0 = arith.constant 0 : i32
    %c0_i32_1 = arith.constant 0 : i32
    return %arg0, %c0_i32, %c0_i32_0 : i32, i32, i32
  }
}

</mosaic_0001>

<bundles_post_ra>
// kernel: tpu_custom_call.1
= control target key start
LH: loop header
LB: loop body
LE: loop exit
PB: predicated region body
PF: predicated region fallthrough
CT: control target
= control target key end

     0   :  { %7 = vsyncpa [#allocation3], 0  ;;  %s868_s0 = inlined_call_operand.hbm [shape: f32[4,128], index: 0, kind: input, shape index: {}]   ;;  %s869_s1 = inlined_call_operand.hbm [shape: f32[4,128], index: 1, kind: input, shape index: {}]   ;;  %s870_s2 = inlined_call_operand.hbm [shape: f32[2,8,128], index: 2, kind: output, shape index: {}]  }
   0x1   :  { %9 = vsyncpa [#allocation3 + $0x1], 0 }
   0x2   :  { %10 = vsyncpa [#allocation6], 0 }
   0x3   :  { %12 = vsyncpa [#allocation6 + $0x1], 0 }
   0x4   :  { %13 = vsyncpa [#allocation4], 0 }
   0x5   :  { %15 = vsyncpa [#allocation4 + $0x1], 0  ;;  %s723_s9 = smov 0   ;;  %s725_s10 = smov 0  }
   0x6   :  { %s727_s11 = smov 0   ;;  %s729_s12 = smov 0  }
   0x7   :  { %s731_s13 = smov 0   ;;  %s733_s14 = smov 0  }
   0x8   :  { %s735_s15 = smov 0   ;;  %s737_s16 = smov 0  }
   0x9 LB: > { %s396_s17 = sadd.s32 4294967295, %s700_s16   ;;  %s397_s18 = sadd.s32 4294967294, %s700_s16   ;;  %s700_s16 = sphi %s737_s16, %s21_s16   ;;  %s696_s15 = sphi %s735_s15, %s880_s15   ;;  %s692_s14 = sphi %s733_s14, %s879_s14   ;;  %s688_s13 = sphi %s731_s13, %s858_s13   ;;  %s684_s12 = sphi %s729_s12, %s878_s12   ;;  %s680_s11 = sphi %s727_s11, %s877_s11   ;;  %s676_s10 = sphi %s725_s10, %s876_s10   ;;  %s672_s9 = sphi %s723_s9, %s875_s9  }
   0xa   : > { %s33_s19 = sadd.s32 1, %s696_s15  ;;  %p669_p1 = scmp.ne.s32.totalorder %s688_s13, 0 }
   0xb   : > { %p35_p0 = scmp.ge.s32.totalorder %s33_s19, 2  ;;  %p54_p2 = scmp.eq.s32.totalorder %s700_s16, 0 }
   0xc   : > { %p59_p3 = scmp.ne.s32.totalorder %s688_s13, %s684_s12  ;;  %p60_p5 = scmp.eq.s32.totalorder %s396_s17, 0 }
   0xd   : > { %s882_s19 = smov (%p35_p0, %s33_s19), 0  ;;  %p769_p4 = por %p669_p1, %p54_p2 }
   0xe   : > { %p773_p6 = por %p60_p5, %p59_p3  ;;  %s101_s22 = ssub.s32 %s696_s15, %s882_s19 }
   0xf   : > { %p102_p7 = scmp.eq.s32.totalorder %s101_s22, 0  ;;  %s104_s23 = sadd.s32 1, %s680_s11 }
  0x10   : > { %p114_p8 = scmp.ne.s32.totalorder %s680_s11, %s676_s10  ;;  %p115_p9 = scmp.eq.s32.totalorder %s396_s17, 1 }
  0x11   : > { %s781_s24 = scalar_select %p102_p7, %s680_s11, %s104_s23  }
  0x12   : > { %p120_p10 = scmp.ne.s32.totalorder %s676_s10, %s672_s9  ;;  %p121_p11 = scmp.eq.s32.totalorder %s397_s18, 1 }
  0x13   : > { %p787_p12 = por %p115_p9, %p114_p8  ;;  %p399_p0 = scmp.ge.s32.totalorder %s700_s16, 2 }
  0x14   : > { %p791_p13 = por %p121_p11, %p120_p10 }
  0x15   : > { %137 = sbr.rel (%p399_p0) target bundleno = 70 (0x46), region = 16 }
  0x1a   : > { %140 = sbr.rel (!%p769_p4) target bundleno = 48 (0x30), region = 20 }
  0x1f   : > { %154 = vsyncadd [#allocation3], 64  ;;  %s702_s27 = smov [#allocation2]   ;;  %s159_s3 = sshll.u32 %s868_s0, 4  ;;  %s160_s3 = int_to_ptr.hbm [resolvable:$true] %s159_s3 }
  0x20   : > { %s161_s28 = sshll.u32 %s702_s27, 4  ;;  %s511_s4 = sshra.s32 %s160_s3, 4  ;;  %s162_s28 = int_to_ptr.vmem [resolvable:$true] %s161_s28  ;;  %s512_s4 = int_to_ptr.hbm [resolvable:$true] %s511_s4 }
  0x21   : > { %s518_s5 = scalar_lea.hbm %s512_s4, 4  ;;  %s522_s8 = scalar_lea.hbm %s868_s0, 4 }
  0x22   : > { %p519_p1 = scmp.ne.s32.totalorder %s512_s4, %s518_s5  ;;  %p524_p2 = scmp.lt.s32.totalorder %s522_s8, %s518_s5 }
  0x24   : > { %p526_p3 = pnand %p524_p2, %p519_p1 }
  0x26   : > { %529 = shalt.err (!%p526_p3)
}
  0x27   : > { %s530_s12 = sshra.s32 %s162_s28, 4  ;;  %s541_s18 = scalar_lea.vmem %s702_s27, 16  ;;  %s531_s12 = int_to_ptr.vmem [resolvable:$true] %s530_s12 }
  0x28   : > { %s537_s17 = scalar_lea.vmem %s531_s12, 4 }
  0x29   : > { %p538_p5 = scmp.ne.s32.totalorder %s531_s12, %s537_s17  ;;  %p543_p7 = scmp.lt.s32.totalorder %s541_s18, %s537_s17 }
  0x2b   : > { %p545_p8 = pnand %p543_p7, %p538_p5 }
  0x2d   : > { %548 = shalt.err (!%p545_p8)
}
  0x2e   : > { %s703_s22 = smov 64   ;;  %s704_s23 = smov 4  }
  0x2f   : > { %167 = dma.hbm_to_vmem [thread:$0]  %s160_s3, 64, %s162_s28, [#allocation3], %s703_s22, %s703_s22, %s704_s23  }
  0x30 PF: > { %170 = sbr.rel (!%p769_p4) target bundleno = 70 (0x46), region = 24 }
  0x35   : > { %184 = vsyncadd [#allocation6], 64  ;;  %s705_s29 = smov [#allocation5]   ;;  %s189_s6 = sshll.u32 %s869_s1, 4  ;;  %s190_s6 = int_to_ptr.hbm [resolvable:$true] %s189_s6 }
  0x36   : > { %s191_s30 = sshll.u32 %s705_s29, 4  ;;  %s550_s27 = sshra.s32 %s190_s6, 4  ;;  %s192_s30 = int_to_ptr.vmem [resolvable:$true] %s191_s30  ;;  %s551_s27 = int_to_ptr.hbm [resolvable:$true] %s550_s27 }
  0x37   : > { %s557_s7 = scalar_lea.hbm %s551_s27, 4  ;;  %s561_s28 = scalar_lea.hbm %s869_s1, 4 }
  0x38   : > { %p558_p9 = scmp.ne.s32.totalorder %s551_s27, %s557_s7  ;;  %p563_p10 = scmp.lt.s32.totalorder %s561_s28, %s557_s7 }
  0x3a   : > { %p565_p11 = pnand %p563_p10, %p558_p9 }
  0x3c   : > { %568 = shalt.err (!%p565_p11)
}
  0x3d   : > { %s569_s20 = sshra.s32 %s192_s30, 4  ;;  %s580_s17 = scalar_lea.vmem %s705_s29, 16  ;;  %s570_s20 = int_to_ptr.vmem [resolvable:$true] %s569_s20 }
  0x3e   : > { %s576_s3 = scalar_lea.vmem %s570_s20, 4 }
  0x3f   : > { %p577_p4 = scmp.ne.s32.totalorder %s570_s20, %s576_s3  ;;  %p582_p1 = scmp.lt.s32.totalorder %s580_s17, %s576_s3 }
  0x41   : > { %p584_p2 = pnand %p582_p1, %p577_p4 }
  0x43   : > { %587 = shalt.err (!%p584_p2)
}
  0x44   : > { %s706_s18 = smov 64   ;;  %s707_s22 = smov 4  }
  0x45   : > { %197 = dma.hbm_to_vmem [thread:$0]  %s190_s6, 64, %s192_s30, [#allocation6], %s706_s18, %s706_s18, %s707_s22  }
  0x46 PF: > { %p414_p3 = scmp.ge.s32.totalorder %s700_s16, 1  ;;  %p199_p5 = scmp.lt.s32.totalorder %s700_s16, 3 }
  0x48   : > { %p200_p7 = pnand %p414_p3, %p199_p5 }
  0x49   : > { %s205_s23 = sand.u32 (!%p200_p7), 1, %s688_s13  }
  0x4a   : > { %203 = sbr.rel (%p200_p7) target bundleno = 98 (0x62), region = 28  ;;  %s415_s4 = sshll.u32 (!%p200_p7), %s205_s23, 3 }
  0x4b   : > { %s206_s5 = scalar_lea.sflag (!%p200_p7), [#allocation3], %s205_s23  ;;  %s209_s29 = scalar_lea.vmem (!%p200_p7), [#allocation2], %s415_s4 }
  0x4f   : > { %654 = dma.done.wait (%p773_p6), %s206_s5, 128  }
  0x50   : > { %656 = vsyncadd (%p773_p6), %s206_s5, 4294967168  ;;  %s216_s30 = scalar_lea.sflag [#allocation6], %s205_s23  ;;  %s219_s6 = scalar_lea.vmem [#allocation5], %s415_s4 }
  0x51   : > { %658 = dma.done.wait (%p773_p6), %s216_s30, 128  }
  0x52   : > { %660 = vsyncadd (%p773_p6), %s216_s30, 4294967168  ;;  %s418_s27 = sshll.u32 %s692_s14, 3  ;;  %v265_v0 = vlaneseq  ;;  %s243_s7 = sand.u32 1, %s676_s10   ;;  %v270_v4 = vld [vmem:[%s209_s29] sm:$0xff]  ;;  %v271_v5 = vld [vmem:[%s219_s6] sm:$0xff] }
  0x53   : > { %v267_v2 = vstv %s418_s27  ;;  %s417_s8 = sshll.u32 %s243_s7, 3  ;;  %s290_s20 = scalar_lea.hbm %s870_s2, %s418_s27  ;;  %v272_v6 = vsub.f32 %v270_v4, %v271_v5 }
  0x54   : > { %v266_v1 = vshrl.u32 %v265_v0, 7  ;;  %s245_s21 = scalar_lea.vmem [#allocation7], %s417_s8  ;;  %s294_s17 = sshll.u32 %s290_s20, 4  ;;  %s295_s17 = int_to_ptr.hbm [resolvable:$true] %s294_s17 }
  0x55   : > { %v273_v7 = vmul.f32 %v272_v6, %v272_v6  ;;  %s292_s3 = sshll.u32 %s245_s21, 4  ;;  %s280_s14 = scalar_lea.sflag [#allocation4], %s243_s7  ;;  %s293_s3 = int_to_ptr.vmem [resolvable:$true] %s292_s3 }
  0x56   : > { %v268_v3 = vadd.s32 %v267_v2, %v266_v1  ;;  %s603_s18 = sshra.s32 %s295_s17, 4  ;;  %s609_s5 = scalar_lea.hbm %s870_s2, 16  ;;  %s604_s18 = int_to_ptr.hbm [resolvable:$true] %s603_s18 }
  0x57   : > { %s605_s22 = scalar_lea.hbm %s604_s18, 8  ;;  %p610_p10 = scmp.lt.s32.totalorder %s604_s18, %s870_s2 }
  0x58   : > { %vm269_vm0 = vcmp.lt.s32.totalorder %v268_v3, 4  ;;  %p606_p6 = scmp.ne.s32.totalorder %s604_s18, %s605_s22  ;;  %p611_p11 = scmp.lt.s32.totalorder %s609_s5, %s605_s22 }
  0x59   : > { %v274_v8 = vsel %vm269_vm0, %v273_v7, 0.0 }
  0x5a   : > { %278 = vst [vmem:[%s245_s21] sm:$0xff] %v274_v8  ;;  %p607_p8 = pnand %p606_p6, %p787_p12  ;;  %p612_p4 = por %p611_p11, %p610_p10 }
  0x5c   : > { %p608_p9 = pneg %p607_p8 }
  0x5e   : > { %p613_p1 = pnand %p612_p4, %p608_p9 }
  0x60   : > { %616 = shalt.err (!%p613_p1)
}
  0x61   : > { %427 = dma.vmem_to_hbm [thread:$0]  (%p787_p12), %s293_s3, 128, %s295_s17, %s280_s14  }
  0x62 PF: > { %s306_s6 = sand.u32 1, %s672_s9   ;;  %p430_p2 = pnand %p399_p0, %p791_p13 }
  0x63   : > { %s307_s27 = scalar_lea.sflag [#allocation4], %s306_s6 }
  0x64   : > { %p431_p3 = pneg %p430_p2 }
  0x66   : > { %662 = dma.done.wait (%p431_p3), %s307_s27, 128  }
  0x67   : > { %664 = vsyncadd (%p431_p3), %s307_s27, 4294967168  ;;  %s21_s16 = sadd.s32 1, %s700_s16   ;;  %s875_s9 = smov %s676_s10 }
  0x68   : > { %p18_p5 = scmp.ge.s32.totalorder %s21_s16, 4   ;;  %s876_s10 = smov %s680_s11 }
  0x69   : > { %s877_s11 = smov %s781_s24  ;;  %s878_s12 = smov %s688_s13 }
  0x6a   : > { %s858_s13 = smov 0   ;;  %s879_s14 = smov %s696_s15 }
  0x6b   : > { %s880_s15 = smov %s882_s19  ;;  %20 = sbr.rel (!%p18_p5) target bundleno = 9 (0x9), region = 90 }
  0x70   :  { %313 = vsyncpa [#allocation3], 1 }
  0x71   :  { %315 = vsyncpa [#allocation3 + $0x1], 1 }
  0x72   :  { %316 = vsyncpa [#allocation6], 1 }
  0x73   :  { %318 = vsyncpa [#allocation6 + $0x1], 1 }
  0x74   :  { %319 = vsyncpa [#allocation4], 1 }
  0x75   :  { %321 = vsyncpa [#allocation4 + $0x1], 1 }

</bundles_post_ra>
